<compile_context>
chip_gen: v7x
topology: tpu7x:2x2x1
jax: 0.10.0
libtpu: 0.0.40
codegen_flags: <defaults>
</compile_context>

<pallas_src>
import functools

import jax
import jax.numpy as jnp
from jax.experimental import pallas as pl
from jax.experimental.pallas import tpu as pltpu


# ----------------------------------------------------------------------------
# Synthetic stand-ins for `constants` / `utils` used by mpra_predictor
# ----------------------------------------------------------------------------
MPRA_UPSTREAM = "CAGCTGACGTACGATC"     # synthetic constants.MPRA_UPSTREAM
MPRA_DOWNSTREAM = "GTACGATCGTAGCATG"   # synthetic constants.MPRA_DOWNSTREAM
_BASE_IDX = {"A": 0, "C": 1, "G": 2, "T": 3}


def dna2tensor_lc(seq):
    """Like utils.dna2tensor but channel-last: one-hot (len, 4) float32."""
    idx = jnp.array([_BASE_IDX[c] for c in seq], dtype=jnp.int32)
    return jax.nn.one_hot(idx, 4, dtype=jnp.float32)  # (len, 4)


def _round_up(x, m):
    return ((x + m - 1) // m) * m


# ----------------------------------------------------------------------------
# Pallas kernel: conv(same) -> ReLU -> mean-pool -> head column, batch on lanes
# ----------------------------------------------------------------------------
def mpra_model_kernel(x_ref, w_ref, wh_ref, o_ref, *, L, K, C2, H):
    # x_ref : (Lp*C2, TB) bf16  padded one-hot (+bias channel) sequences,
    #                           one sequence per lane (batch on lane axis).
    # w_ref : (H, K*C2)   bf16  fused conv weight; conv bias folded in via
    #                           the all-ones bias channel.
    # wh_ref: (1, H)      f32   head row for pred_idx with 1/L folded in.
    # o_ref : (1, TB)     f32   per-sequence prediction (head bias added by
    #                           the wrapper).
    KC = K * C2
    TB = x_ref.shape[1]
    w = w_ref[...]
    acc = jnp.zeros((H, TB), jnp.float32)
    for l in range(L):  # static unrolled loop; slices are sublane-aligned (C2=8)
        slab = x_ref[l * C2:l * C2 + KC, :]                 # (KC, TB) recept. field
        hl = jnp.dot(w, slab, preferred_element_type=jnp.float32)   # (H, TB)
        acc = acc + jnp.maximum(hl, 0.0)                    # ReLU before pooling
    # mean-pool (1/L folded into wh) + head column -> lane-dense (1, TB) row
    o_ref[...] = jnp.dot(wh_ref[...], acc, preferred_element_type=jnp.float32)


# ----------------------------------------------------------------------------
# Wrapper reproducing mpra_predictor semantics
# ----------------------------------------------------------------------------
class MPRAPredictorPallas:
    LANE = 128     # batch-tile granularity (lane width)
    MAX_TB = 512   # max sequences per grid step; ~1 MiB/tile, fits all TPU gens

    def __init__(self, params, pred_idx=0, ini_in_len=8, model_in_len=16,
                 cat_axis=-1, dual_pred=False):
        w_conv, b_conv, w_lin, b_lin = params        # (K,C,H),(1,H),(H,O),(1,O)
        self.K, self.C, self.H = w_conv.shape
        self.O = w_lin.shape[1]
        self.pred_idx = pred_idx
        self.ini_in_len = ini_in_len
        self.model_in_len = model_in_len
        self.cat_axis = cat_axis                     # module always cats on length
        self.dual_pred = dual_pred
        self.pad = (self.K - 1) // 2                 # 'same' conv padding

        # channels padded to a sublane multiple: [A, C, G, T, bias_one, 0, 0, 0]
        self.C2 = 8
        assert self.C + 1 <= self.C2

        # -------- hoisted weight re-layout (done once, not per forward) -----
        w_aug = jnp.zeros((self.K, self.C2, self.H), jnp.float32)
        w_aug = w_aug.at[:, :self.C, :].set(w_conv.astype(jnp.float32))
        # Conv bias fold: the bias channel is 1 at every (padded) position, so
        # putting b_conv at a single tap (k=0) adds it exactly once per output.
        w_aug = w_aug.at[0, self.C, :].set(b_conv[0].astype(jnp.float32))
        self.w_fused_T = (w_aug.reshape(self.K * self.C2, self.H).T
                          .astype(jnp.bfloat16))                      # (H, K*C2)
        # head row for pred_idx with the 1/L mean-pool factor folded in
        self.wh_over_L = (w_lin[:, pred_idx][None, :] /
                          float(model_in_len)).astype(jnp.float32)    # (1, H)
        self.bh = jnp.float32(b_lin[0, pred_idx])                     # scalar

        self._register_flanks()
        self._forward = jax.jit(self._forward_impl)

    # --- flanks (precomputed once, channel-last so no per-call transpose) ----
    def _register_flanks(self):
        missing_len = self.model_in_len - self.ini_in_len
        left_idx = -missing_len // 2 + missing_len % 2
        right_idx = missing_len // 2 + missing_len % 2
        self.left_flank_lc = dna2tensor_lc(MPRA_UPSTREAM[left_idx:])      # (Lf, 4)
        self.right_flank_lc = dna2tensor_lc(MPRA_DOWNSTREAM[:right_idx])  # (Rf, 4)

    # --- synthetic model forward via one pallas_call ------------------------
    def _model_call(self, seq_lc):
        """seq_lc: (Bt, L, 4) channel-last one-hot -> (Bt,) pred_idx outputs."""
        Bt, L, C = seq_lc.shape
        K, C2, H = self.K, self.C2, self.H
        Lp = L + 2 * self.pad

        # input prep in XLA (fused under jit): pad length, append bias/zero
        # channels, transpose so batch sits on the lane axis.  NO im2col.
        xp = jnp.pad(seq_lc, ((0, 0), (self.pad, self.pad), (0, 0)))  # (Bt,Lp,C)
        bias_ch = jnp.ones((Bt, Lp, 1), xp.dtype)
        zero_ch = jnp.zeros((Bt, Lp, C2 - C - 1), xp.dtype)
        xc = jnp.concatenate([xp, bias_ch, zero_ch], axis=-1)         # (Bt,Lp,C2)

        # batch tiling: pad batch to a multiple of the tile (tile is a multiple
        # of 128 lanes).  Realistic batches (>=1024) give nb>=2 so the
        # ("parallel",) axis shards across both TensorCores on v7x.
        TB = min(self.MAX_TB, _round_up(max(Bt, 1), self.LANE))
        Bt_pad = _round_up(Bt, TB)
        nb = Bt_pad // TB

        x2 = xc.reshape(Bt, Lp * C2)
        x2 = jnp.pad(x2, ((0, Bt_pad - Bt), (0, 0)))
        x_t = x2.T.astype(jnp.bfloat16)                               # (Lp*C2, Bt_pad)

        kernel = functools.partial(mpra_model_kernel, L=L, K=K, C2=C2, H=H)

        flops = 2 * Bt_pad * L * H * (K * C2) + 2 * Bt_pad * H
        bytes_accessed = (Lp * C2 * Bt_pad * 2            # bf16 input slab
                          + self.w_fused_T.size * 2       # bf16 conv weight
                          + self.wh_over_L.size * 4       # f32 head row
                          + Bt_pad * 4)                   # f32 output row

        out = pl.pallas_call(
            kernel,
            out_shape=jax.ShapeDtypeStruct((1, Bt_pad), jnp.float32),
            grid=(nb,),
            in_specs=[
                pl.BlockSpec((Lp * C2, TB), lambda i: (0, i)),
                pl.BlockSpec((H, K * C2), lambda i: (0, 0)),
                pl.BlockSpec((1, H), lambda i: (0, 0)),
            ],
            out_specs=pl.BlockSpec((1, TB), lambda i: (0, i)),
            compiler_params=pltpu.CompilerParams(
                dimension_semantics=("parallel",),
                vmem_limit_bytes=64 * 1024 * 1024),
            cost_estimate=pl.CostEstimate(
                flops=flops, transcendentals=0, bytes_accessed=bytes_accessed),
        )(x_t, self.w_fused_T, self.wh_over_L)
        return out[0, :Bt] + self.bh

    # --- full forward (jitted): tile flanks, concat, (dual), kernel ---------
    def _forward_impl(self, x):
        """x: (B, 4, ini_in_len) NCL (matches torch) -> (B,)."""
        B = x.shape[0]
        x_lc = jnp.transpose(x, (0, 2, 1)).astype(jnp.float32)        # (B, ini, 4)
        lf = jnp.broadcast_to(self.left_flank_lc[None],
                              (B,) + self.left_flank_lc.shape)
        rf = jnp.broadcast_to(self.right_flank_lc[None],
                              (B,) + self.right_flank_lc.shape)
        seq = jnp.concatenate([lf, x_lc, rf], axis=1)                 # (B, L, 4)
        if self.dual_pred:
            # reverse-complement: reverse length and channel order (A<->T, C<->G)
            seq = jnp.concatenate([seq, seq[:, ::-1, ::-1]], axis=0)  # (2B, L, 4)
            out = self._model_call(seq)                               # one kernel call
            out = 0.5 * (out[:B] + out[B:])
        else:
            out = self._model_call(seq)
        return out

    def forward(self, x):
        return self._forward(x)


# ----------------------------------------------------------------------------
# Pure-JAX f32 reference of the same synthetic model (for correctness check)
# ----------------------------------------------------------------------------
def ref_model(seq_ncl, w_conv, b_conv, w_lin, b_lin):
    K, C, H = w_conv.shape
    x = jnp.transpose(seq_ncl, (0, 2, 1)).astype(jnp.float32)
    pad = (K - 1) // 2
    xp = jnp.pad(x, ((0, 0), (pad, pad), (0, 0)))
    L = x.shape[1]
    acc = jnp.zeros((x.shape[0], L, H), jnp.float32)
    for k in range(K):
        acc = acc + jnp.einsum("blc,ch->blh", xp[:, k:k + L, :], w_conv[k])
    acc = jnp.maximum(acc + b_conv[0], 0.0)
    pooled = jnp.mean(acc, axis=1)
    return pooled @ w_lin + b_lin[0]


# ----------------------------------------------------------------------------
# Main
# ----------------------------------------------------------------------------
if __name__ == "__main__":
    B, C, INI_LEN, MODEL_LEN = 2, 4, 8, 16
    K, H, O = 5, 32, 3
    PRED_IDX = 0

    key = jax.random.PRNGKey(0)
    k_x, k_wc, k_bc, k_wl, k_bl = jax.random.split(key, 5)

    # deterministic synthetic model parameters
    w_conv = 0.1 * jax.random.normal(k_wc, (K, C, H), jnp.float32)
    b_conv = 0.1 * jax.random.normal(k_bc, (1, H), jnp.float32)
    w_lin = 0.1 * jax.random.normal(k_wl, (H, O), jnp.float32)
    b_lin = 0.1 * jax.random.normal(k_bl, (1, O), jnp.float32)

    # input sequence tensor (NCL, like PyTorch) -- one-hot DNA
    base_idx = jax.random.randint(k_x, (B, INI_LEN), 0, 4)
    x = jnp.transpose(jax.nn.one_hot(base_idx, 4, dtype=jnp.float32),
                      (0, 2, 1))  # (B, 4, 8)

    params = (w_conv, b_conv, w_lin, b_lin)

    # bf16 weights / activation slab -> compare against f32 reference at 1e-2
    TOL = 1e-2

    # ---------------- single-direction prediction --------------------------
    predictor = MPRAPredictorPallas(params, pred_idx=PRED_IDX,
                                    ini_in_len=INI_LEN, model_in_len=MODEL_LEN,
                                    cat_axis=-1, dual_pred=False)
    out = jax.block_until_ready(predictor.forward(x))

    # reference: build the concatenated NCL tensor the same way the module does
    lf_ncl = jnp.transpose(predictor.left_flank_lc)[None]    # (1, 4, Lf)
    rf_ncl = jnp.transpose(predictor.right_flank_lc)[None]   # (1, 4, Rf)
    in_tensor = jnp.concatenate(
        [jnp.tile(lf_ncl, (B, 1, 1)), x, jnp.tile(rf_ncl, (B, 1, 1))], axis=-1)
    ref = ref_model(in_tensor, w_conv, b_conv, w_lin, b_lin)[:, PRED_IDX]
    assert out.shape == (B,)
    assert jnp.allclose(out, ref, atol=TOL, rtol=TOL), (out, ref)

    # ---------------- dual (reverse-complement averaged) prediction --------
    predictor_dual = MPRAPredictorPallas(params, pred_idx=PRED_IDX,
                                         ini_in_len=INI_LEN,
                                         model_in_len=MODEL_LEN,
                                         cat_axis=-1, dual_pred=True)
    out_dual = jax.block_until_ready(predictor_dual.forward(x))
    rc_tensor = in_tensor[:, ::-1, ::-1]
    ref_dual = 0.5 * (
        ref_model(in_tensor, w_conv, b_conv, w_lin, b_lin)[:, PRED_IDX]
        + ref_model(rc_tensor, w_conv, b_conv, w_lin, b_lin)[:, PRED_IDX])
    assert out_dual.shape == (B,)
    assert jnp.allclose(out_dual, ref_dual, atol=TOL, rtol=TOL), (out_dual, ref_dual)

    print("KERNEL_OK")
</pallas_src>

<mosaic_0001>
module attributes {stable_mosaic.version = 11 : i64} {
  func.func @mpra_model_kernel(%arg0: i32, %arg1: memref<160x128xbf16, #tpu.memory_space<vmem>>, %arg2: memref<32x40xbf16, #tpu.memory_space<vmem>>, %arg3: memref<1x32xf32, #tpu.memory_space<vmem>>, %arg4: memref<1x128xf32, #tpu.memory_space<vmem>>) attributes {dimension_semantics = [#tpu.dimension_semantics<parallel>], iteration_bounds = array<i64: 1>, scalar_prefetch = 0 : i64, scratch_operands = 0 : i64, tpu.core_type = #tpu.core_type<tc>, window_params = [{transform_indices = @transform_0, window_bounds = array<i64: 160, 128>}, {pipeline_mode = #tpu.pipeline_mode<synchronous>, transform_indices = @transform_1, window_bounds = array<i64: 32, 40>}, {pipeline_mode = #tpu.pipeline_mode<synchronous>, transform_indices = @transform_2, window_bounds = array<i64: 1, 32>}, {transform_indices = @transform_3, window_bounds = array<i64: 1, 128>}]} {
    %c0 = arith.constant 0 : index
    %c0_0 = arith.constant 0 : index
    %0 = vector.load %arg2[%c0, %c0_0] : memref<32x40xbf16, #tpu.memory_space<vmem>>, vector<32x40xbf16>
    %cst = arith.constant 0.000000e+00 : f32
    %1 = vector.broadcast %cst : f32 to vector<32x128xf32>
    %c0_1 = arith.constant 0 : index
    %c0_2 = arith.constant 0 : index
    %2 = vector.load %arg1[%c0_1, %c0_2] : memref<160x128xbf16, #tpu.memory_space<vmem>>, vector<40x128xbf16>
    %cst_3 = arith.constant dense<0.000000e+00> : vector<32x128xf32>
    %3 = tpu.matmul %0, %2, %cst_3 {dimension_numbers = #tpu.dot_dimension_numbers<[1], [0], [0], [1], [0, 0, 1, 1], [], []>} : vector<32x40xbf16>, vector<40x128xbf16>, vector<32x128xf32> -> vector<32x128xf32>
    %cst_4 = arith.constant 0.000000e+00 : f32
    %4 = vector.broadcast %cst_4 : f32 to vector<32x128xf32>
    %5 = arith.maximumf %3, %4 : vector<32x128xf32>
    %6 = arith.addf %1, %5 : vector<32x128xf32>
    %c8 = arith.constant 8 : index
    %c0_5 = arith.constant 0 : index
    %7 = vector.load %arg1[%c8, %c0_5] : memref<160x128xbf16, #tpu.memory_space<vmem>>, vector<40x128xbf16>
    %cst_6 = arith.constant dense<0.000000e+00> : vector<32x128xf32>
    %8 = tpu.matmul %0, %7, %cst_6 {dimension_numbers = #tpu.dot_dimension_numbers<[1], [0], [0], [1], [0, 0, 1, 1], [], []>} : vector<32x40xbf16>, vector<40x128xbf16>, vector<32x128xf32> -> vector<32x128xf32>
    %cst_7 = arith.constant 0.000000e+00 : f32
    %9 = vector.broadcast %cst_7 : f32 to vector<32x128xf32>
    %10 = arith.maximumf %8, %9 : vector<32x128xf32>
    %11 = arith.addf %6, %10 : vector<32x128xf32>
    %c16 = arith.constant 16 : index
    %c0_8 = arith.constant 0 : index
    %12 = vector.load %arg1[%c16, %c0_8] : memref<160x128xbf16, #tpu.memory_space<vmem>>, vector<40x128xbf16>
    %cst_9 = arith.constant dense<0.000000e+00> : vector<32x128xf32>
    %13 = tpu.matmul %0, %12, %cst_9 {dimension_numbers = #tpu.dot_dimension_numbers<[1], [0], [0], [1], [0, 0, 1, 1], [], []>} : vector<32x40xbf16>, vector<40x128xbf16>, vector<32x128xf32> -> vector<32x128xf32>
    %cst_10 = arith.constant 0.000000e+00 : f32
    %14 = vector.broadcast %cst_10 : f32 to vector<32x128xf32>
    %15 = arith.maximumf %13, %14 : vector<32x128xf32>
    %16 = arith.addf %11, %15 : vector<32x128xf32>
    %c24 = arith.constant 24 : index
    %c0_11 = arith.constant 0 : index
    %17 = vector.load %arg1[%c24, %c0_11] : memref<160x128xbf16, #tpu.memory_space<vmem>>, vector<40x128xbf16>
    %cst_12 = arith.constant dense<0.000000e+00> : vector<32x128xf32>
    %18 = tpu.matmul %0, %17, %cst_12 {dimension_numbers = #tpu.dot_dimension_numbers<[1], [0], [0], [1], [0, 0, 1, 1], [], []>} : vector<32x40xbf16>, vector<40x128xbf16>, vector<32x128xf32> -> vector<32x128xf32>
    %cst_13 = arith.constant 0.000000e+00 : f32
    %19 = vector.broadcast %cst_13 : f32 to vector<32x128xf32>
    %20 = arith.maximumf %18, %19 : vector<32x128xf32>
    %21 = arith.addf %16, %20 : vector<32x128xf32>
    %c32 = arith.constant 32 : index
    %c0_14 = arith.constant 0 : index
    %22 = vector.load %arg1[%c32, %c0_14] : memref<160x128xbf16, #tpu.memory_space<vmem>>, vector<40x128xbf16>
    %cst_15 = arith.constant dense<0.000000e+00> : vector<32x128xf32>
    %23 = tpu.matmul %0, %22, %cst_15 {dimension_numbers = #tpu.dot_dimension_numbers<[1], [0], [0], [1], [0, 0, 1, 1], [], []>} : vector<32x40xbf16>, vector<40x128xbf16>, vector<32x128xf32> -> vector<32x128xf32>
    %cst_16 = arith.constant 0.000000e+00 : f32
    %24 = vector.broadcast %cst_16 : f32 to vector<32x128xf32>
    %25 = arith.maximumf %23, %24 : vector<32x128xf32>
    %26 = arith.addf %21, %25 : vector<32x128xf32>
    %c40 = arith.constant 40 : index
    %c0_17 = arith.constant 0 : index
    %27 = vector.load %arg1[%c40, %c0_17] : memref<160x128xbf16, #tpu.memory_space<vmem>>, vector<40x128xbf16>
    %cst_18 = arith.constant dense<0.000000e+00> : vector<32x128xf32>
    %28 = tpu.matmul %0, %27, %cst_18 {dimension_numbers = #tpu.dot_dimension_numbers<[1], [0], [0], [1], [0, 0, 1, 1], [], []>} : vector<32x40xbf16>, vector<40x128xbf16>, vector<32x128xf32> -> vector<32x128xf32>
    %cst_19 = arith.constant 0.000000e+00 : f32
    %29 = vector.broadcast %cst_19 : f32 to vector<32x128xf32>
    %30 = arith.maximumf %28, %29 : vector<32x128xf32>
    %31 = arith.addf %26, %30 : vector<32x128xf32>
    %c48 = arith.constant 48 : index
    %c0_20 = arith.constant 0 : index
    %32 = vector.load %arg1[%c48, %c0_20] : memref<160x128xbf16, #tpu.memory_space<vmem>>, vector<40x128xbf16>
    %cst_21 = arith.constant dense<0.000000e+00> : vector<32x128xf32>
    %33 = tpu.matmul %0, %32, %cst_21 {dimension_numbers = #tpu.dot_dimension_numbers<[1], [0], [0], [1], [0, 0, 1, 1], [], []>} : vector<32x40xbf16>, vector<40x128xbf16>, vector<32x128xf32> -> vector<32x128xf32>
    %cst_22 = arith.constant 0.000000e+00 : f32
    %34 = vector.broadcast %cst_22 : f32 to vector<32x128xf32>
    %35 = arith.maximumf %33, %34 : vector<32x128xf32>
    %36 = arith.addf %31, %35 : vector<32x128xf32>
    %c56 = arith.constant 56 : index
    %c0_23 = arith.constant 0 : index
    %37 = vector.load %arg1[%c56, %c0_23] : memref<160x128xbf16, #tpu.memory_space<vmem>>, vector<40x128xbf16>
    %cst_24 = arith.constant dense<0.000000e+00> : vector<32x128xf32>
    %38 = tpu.matmul %0, %37, %cst_24 {dimension_numbers = #tpu.dot_dimension_numbers<[1], [0], [0], [1], [0, 0, 1, 1], [], []>} : vector<32x40xbf16>, vector<40x128xbf16>, vector<32x128xf32> -> vector<32x128xf32>
    %cst_25 = arith.constant 0.000000e+00 : f32
    %39 = vector.broadcast %cst_25 : f32 to vector<32x128xf32>
    %40 = arith.maximumf %38, %39 : vector<32x128xf32>
    %41 = arith.addf %36, %40 : vector<32x128xf32>
    %c64 = arith.constant 64 : index
    %c0_26 = arith.constant 0 : index
    %42 = vector.load %arg1[%c64, %c0_26] : memref<160x128xbf16, #tpu.memory_space<vmem>>, vector<40x128xbf16>
    %cst_27 = arith.constant dense<0.000000e+00> : vector<32x128xf32>
    %43 = tpu.matmul %0, %42, %cst_27 {dimension_numbers = #tpu.dot_dimension_numbers<[1], [0], [0], [1], [0, 0, 1, 1], [], []>} : vector<32x40xbf16>, vector<40x128xbf16>, vector<32x128xf32> -> vector<32x128xf32>
    %cst_28 = arith.constant 0.000000e+00 : f32
    %44 = vector.broadcast %cst_28 : f32 to vector<32x128xf32>
    %45 = arith.maximumf %43, %44 : vector<32x128xf32>
    %46 = arith.addf %41, %45 : vector<32x128xf32>
    %c72 = arith.constant 72 : index
    %c0_29 = arith.constant 0 : index
    %47 = vector.load %arg1[%c72, %c0_29] : memref<160x128xbf16, #tpu.memory_space<vmem>>, vector<40x128xbf16>
    %cst_30 = arith.constant dense<0.000000e+00> : vector<32x128xf32>
    %48 = tpu.matmul %0, %47, %cst_30 {dimension_numbers = #tpu.dot_dimension_numbers<[1], [0], [0], [1], [0, 0, 1, 1], [], []>} : vector<32x40xbf16>, vector<40x128xbf16>, vector<32x128xf32> -> vector<32x128xf32>
    %cst_31 = arith.constant 0.000000e+00 : f32
    %49 = vector.broadcast %cst_31 : f32 to vector<32x128xf32>
    %50 = arith.maximumf %48, %49 : vector<32x128xf32>
    %51 = arith.addf %46, %50 : vector<32x128xf32>
    %c80 = arith.constant 80 : index
    %c0_32 = arith.constant 0 : index
    %52 = vector.load %arg1[%c80, %c0_32] : memref<160x128xbf16, #tpu.memory_space<vmem>>, vector<40x128xbf16>
    %cst_33 = arith.constant dense<0.000000e+00> : vector<32x128xf32>
    %53 = tpu.matmul %0, %52, %cst_33 {dimension_numbers = #tpu.dot_dimension_numbers<[1], [0], [0], [1], [0, 0, 1, 1], [], []>} : vector<32x40xbf16>, vector<40x128xbf16>, vector<32x128xf32> -> vector<32x128xf32>
    %cst_34 = arith.constant 0.000000e+00 : f32
    %54 = vector.broadcast %cst_34 : f32 to vector<32x128xf32>
    %55 = arith.maximumf %53, %54 : vector<32x128xf32>
    %56 = arith.addf %51, %55 : vector<32x128xf32>
    %c88 = arith.constant 88 : index
    %c0_35 = arith.constant 0 : index
    %57 = vector.load %arg1[%c88, %c0_35] : memref<160x128xbf16, #tpu.memory_space<vmem>>, vector<40x128xbf16>
    %cst_36 = arith.constant dense<0.000000e+00> : vector<32x128xf32>
    %58 = tpu.matmul %0, %57, %cst_36 {dimension_numbers = #tpu.dot_dimension_numbers<[1], [0], [0], [1], [0, 0, 1, 1], [], []>} : vector<32x40xbf16>, vector<40x128xbf16>, vector<32x128xf32> -> vector<32x128xf32>
    %cst_37 = arith.constant 0.000000e+00 : f32
    %59 = vector.broadcast %cst_37 : f32 to vector<32x128xf32>
    %60 = arith.maximumf %58, %59 : vector<32x128xf32>
    %61 = arith.addf %56, %60 : vector<32x128xf32>
    %c96 = arith.constant 96 : index
    %c0_38 = arith.constant 0 : index
    %62 = vector.load %arg1[%c96, %c0_38] : memref<160x128xbf16, #tpu.memory_space<vmem>>, vector<40x128xbf16>
    %cst_39 = arith.constant dense<0.000000e+00> : vector<32x128xf32>
    %63 = tpu.matmul %0, %62, %cst_39 {dimension_numbers = #tpu.dot_dimension_numbers<[1], [0], [0], [1], [0, 0, 1, 1], [], []>} : vector<32x40xbf16>, vector<40x128xbf16>, vector<32x128xf32> -> vector<32x128xf32>
    %cst_40 = arith.constant 0.000000e+00 : f32
    %64 = vector.broadcast %cst_40 : f32 to vector<32x128xf32>
    %65 = arith.maximumf %63, %64 : vector<32x128xf32>
    %66 = arith.addf %61, %65 : vector<32x128xf32>
    %c104 = arith.constant 104 : index
    %c0_41 = arith.constant 0 : index
    %67 = vector.load %arg1[%c104, %c0_41] : memref<160x128xbf16, #tpu.memory_space<vmem>>, vector<40x128xbf16>
    %cst_42 = arith.constant dense<0.000000e+00> : vector<32x128xf32>
    %68 = tpu.matmul %0, %67, %cst_42 {dimension_numbers = #tpu.dot_dimension_numbers<[1], [0], [0], [1], [0, 0, 1, 1], [], []>} : vector<32x40xbf16>, vector<40x128xbf16>, vector<32x128xf32> -> vector<32x128xf32>
    %cst_43 = arith.constant 0.000000e+00 : f32
    %69 = vector.broadcast %cst_43 : f32 to vector<32x128xf32>
    %70 = arith.maximumf %68, %69 : vector<32x128xf32>
    %71 = arith.addf %66, %70 : vector<32x128xf32>
    %c112 = arith.constant 112 : index
    %c0_44 = arith.constant 0 : index
    %72 = vector.load %arg1[%c112, %c0_44] : memref<160x128xbf16, #tpu.memory_space<vmem>>, vector<40x128xbf16>
    %cst_45 = arith.constant dense<0.000000e+00> : vector<32x128xf32>
    %73 = tpu.matmul %0, %72, %cst_45 {dimension_numbers = #tpu.dot_dimension_numbers<[1], [0], [0], [1], [0, 0, 1, 1], [], []>} : vector<32x40xbf16>, vector<40x128xbf16>, vector<32x128xf32> -> vector<32x128xf32>
    %cst_46 = arith.constant 0.000000e+00 : f32
    %74 = vector.broadcast %cst_46 : f32 to vector<32x128xf32>
    %75 = arith.maximumf %73, %74 : vector<32x128xf32>
    %76 = arith.addf %71, %75 : vector<32x128xf32>
    %c120 = arith.constant 120 : index
    %c0_47 = arith.constant 0 : index
    %77 = vector.load %arg1[%c120, %c0_47] : memref<160x128xbf16, #tpu.memory_space<vmem>>, vector<40x128xbf16>
    %cst_48 = arith.constant dense<0.000000e+00> : vector<32x128xf32>
    %78 = tpu.matmul %0, %77, %cst_48 {dimension_numbers = #tpu.dot_dimension_numbers<[1], [0], [0], [1], [0, 0, 1, 1], [], []>} : vector<32x40xbf16>, vector<40x128xbf16>, vector<32x128xf32> -> vector<32x128xf32>
    %cst_49 = arith.constant 0.000000e+00 : f32
    %79 = vector.broadcast %cst_49 : f32 to vector<32x128xf32>
    %80 = arith.maximumf %78, %79 : vector<32x128xf32>
    %81 = arith.addf %76, %80 : vector<32x128xf32>
    %c0_50 = arith.constant 0 : index
    %c0_51 = arith.constant 0 : index
    %82 = vector.load %arg3[%c0_50, %c0_51] : memref<1x32xf32, #tpu.memory_space<vmem>>, vector<1x32xf32>
    %cst_52 = arith.constant dense<0.000000e+00> : vector<1x128xf32>
    %83 = tpu.matmul %82, %81, %cst_52 {dimension_numbers = #tpu.dot_dimension_numbers<[1], [0], [0], [1], [0, 0, 1, 1], [], []>} : vector<1x32xf32>, vector<32x128xf32>, vector<1x128xf32> -> vector<1x128xf32>
    %c0_53 = arith.constant 0 : index
    %c0_54 = arith.constant 0 : index
    %84 = vector.load %arg4[%c0_53, %c0_54] : memref<1x128xf32, #tpu.memory_space<vmem>>, vector<1x128xf32>
    tpu.vector_store %arg4[%c0_53, %c0_54], %83 {strides = array<i32>} : memref<1x128xf32, #tpu.memory_space<vmem>>, vector<1x128xf32>,
    return
  }
  func.func @transform_0(%arg0: i32) -> (i32, i32) {
    %c0_i32 = arith.constant 0 : i32
    %c0_i32_0 = arith.constant 0 : i32
    return %c0_i32, %arg0 : i32, i32
  }
  func.func @transform_1(%arg0: i32) -> (i32, i32) {
    %c0_i32 = arith.constant 0 : i32
    %c0_i32_0 = arith.constant 0 : i32
    %c0_i32_1 = arith.constant 0 : i32
    return %c0_i32, %c0_i32_0 : i32, i32
  }
  func.func @transform_2(%arg0: i32) -> (i32, i32) {
    %c0_i32 = arith.constant 0 : i32
    %c0_i32_0 = arith.constant 0 : i32
    %c0_i32_1 = arith.constant 0 : i32
    return %c0_i32, %c0_i32_0 : i32, i32
  }
  func.func @transform_3(%arg0: i32) -> (i32, i32) {
    %c0_i32 = arith.constant 0 : i32
    %c0_i32_0 = arith.constant 0 : i32
    return %c0_i32, %arg0 : i32, i32
  }
}

</mosaic_0001>

<bundles_post_ra>
// kernel: _forward_impl.1
= control target key start
LH: loop header
LB: loop body
LE: loop exit
PB: predicated region body
PF: predicated region fallthrough
CT: control target
= control target key end

     0   :  { %8 = vsyncpa [#allocation3], 0  ;;  %s2149_s0 = inlined_call_operand.hbm [shape: bf16[160,128], index: 0, kind: input, shape index: {}]   ;;  %s2150_s1 = inlined_call_operand.hbm [shape: bf16[32,40], index: 1, kind: input, shape index: {}]   ;;  %s2151_s2 = inlined_call_operand.hbm [shape: f32[1,32], index: 2, kind: input, shape index: {}]   ;;  %s2152_s3 = inlined_call_operand.hbm [shape: f32[1,128], index: 3, kind: output, shape index: {}]  }
   0x1   :  { %9 = vsyncpa [#allocation6], 0 }
   0x2   :  { %10 = vsyncpa [#allocation4], 0  ;;  %s1963_s12 = smov [#allocation5]   ;;  %s1964_s14 = smov [#allocation2]  }
   0x3   :  { %s28_s13 = sshll.u32 %s1963_s12, 4  ;;  %s16_s15 = sshll.u32 %s1964_s14, 4  ;;  %s29_s13 = int_to_ptr.vmem [resolvable:$true] %s28_s13  ;;  %s1992_s15 = int_to_ptr.vmem [resolvable:$true] %s16_s15 }
   0x4   :  { %s1869_s18 = scalar_lea.hbm %s2150_s1, 256 }
   0x5   :  { %p1870_p0 = scmp.ne.s32.totalorder %s2150_s1, %s1869_s18  ;;  %p1873_p1 = scmp.lt.u32.totalorder %s1869_s18, %s2150_s1 }
   0x7   :  { %p1875_p2 = pnand %p1873_p1, %p1870_p0 }
   0x9   :  { %1878 = shalt.err (!%p1875_p2)
}
   0xa   :  { %s1879_s23 = scalar_lea.vmem %s29_s13, 256  ;;  %p1884_p4 = scmp.lt.s32.totalorder %s29_s13, %s29_s13 }
   0xb   :  { %p1880_p3 = scmp.ne.s32.totalorder %s29_s13, %s1879_s23  ;;  %p1885_p5 = scmp.lt.s32.totalorder %s1879_s23, %s1879_s23 }
   0xd   :  { %p1886_p6 = por %p1885_p5, %p1884_p4 }
   0xf   :  { %p1887_p7 = pnand %p1886_p6, %p1880_p3 }
  0x11   :  { %1890 = shalt.err (!%p1887_p7)
}
  0x12   :  { %s1965_s24 = smov 64   ;;  %s1966_s25 = smov 4  }
  0x13   :  { %34 = dma.hbm_to_vmem [thread:$0]  %s2150_s1, 256, %s29_s13, [#allocation6], %s1965_s24, %s1965_s24, %s1966_s25  }
  0x14   :  { %s1891_s30 = scalar_lea.hbm %s2149_s0, 1280 }
  0x15   :  { %p1892_p8 = scmp.ne.s32.totalorder %s2149_s0, %s1891_s30  ;;  %p1895_p9 = scmp.lt.u32.totalorder %s1891_s30, %s2149_s0 }
  0x17   :  { %p1897_p10 = pnand %p1895_p9, %p1892_p8 }
  0x19   :  { %1900 = shalt.err (!%p1897_p10)
}
  0x1a   :  { %s1901_s8 = scalar_lea.vmem %s1992_s15, 1280  ;;  %p1906_p12 = scmp.lt.s32.totalorder %s1992_s15, %s1992_s15 }
  0x1b   :  { %p1902_p11 = scmp.ne.s32.totalorder %s1992_s15, %s1901_s8  ;;  %p1907_p13 = scmp.lt.s32.totalorder %s1901_s8, %s1901_s8 }
  0x1d   :  { %p1908_p0 = por %p1907_p13, %p1906_p12 }
  0x1f   :  { %p1909_p1 = pnand %p1908_p0, %p1902_p11 }
  0x21   :  { %1912 = shalt.err (!%p1909_p1)
}
  0x22   :  { %22 = dma.hbm_to_vmem [thread:$0]  %s2149_s0, 1280, %s1992_s15, [#allocation3], %s1965_s24, %s1965_s24, %s1966_s25  }
  0x23   :  { %s1967_s10 = smov [#allocation7]   ;;  %s1913_s14 = scalar_lea.hbm %s2151_s2, 16 }
  0x24   :  { %s41_s11 = sshll.u32 %s1967_s10, 4  ;;  %p1914_p2 = scmp.ne.s32.totalorder %s2151_s2, %s1913_s14  ;;  %s42_s11 = int_to_ptr.vmem [resolvable:$true] %s41_s11 }
  0x25   :  { %p1917_p3 = scmp.lt.u32.totalorder %s1913_s14, %s2151_s2 }
  0x27   :  { %p1919_p4 = pnand %p1917_p3, %p1914_p2 }
  0x29   :  { %1922 = shalt.err (!%p1919_p4)
}
  0x2a   :  { %s1923_s20 = scalar_lea.vmem %s42_s11, 16  ;;  %s1927_s0 = scalar_lea.vmem %s42_s11, 32 }
  0x2b   :  { %p1924_p5 = scmp.ne.s32.totalorder %s42_s11, %s1923_s20  ;;  %p1928_p6 = scmp.lt.s32.totalorder %s42_s11, %s42_s11 }
  0x2c   :  { %p1929_p7 = scmp.lt.s32.totalorder %s1927_s0, %s1923_s20 }
  0x2e   :  { %p1930_p8 = por %p1929_p7, %p1928_p6 }
  0x30   :  { %p1931_p9 = pnand %p1930_p8, %p1924_p5 }
  0x32   :  { %1934 = shalt.err (!%p1931_p9)
}
  0x33   :  { %44 = dma.hbm_to_vmem [thread:$0]  %s2151_s2, 16, %s42_s11, [#allocation6]  }
  0x34   :  { %1957 = dma.done.wait [#allocation3], 1280  }
  0x35   :  { %1958 = vsyncadd [#allocation3], 4294966016 }
  0x36   :  { %1959 = dma.done.wait [#allocation6], 272  }
  0x37   :  { %1960 = vsyncadd [#allocation6], 4294967024  ;;  %v1819_v0 = vld [vmem:[#allocation2] sm:$0xff]   ;;  %v1821_v2 = vld [vmem:[#allocation2 + $0x8] sm:$0xff]   ;;  %vm96_vm0 = vcmask 1043456   ;;  %vm89_vm1 = vcmask 326656  }
  0x38   :  { %v1820_v1 = vld [vmem:[#allocation2 + $0x4] sm:$0xff]   ;;  %1617 = vmatprep.subr.bf16.mxu0 %v1819_v0  ;;  %v1822_v3 = vld [vmem:[#allocation2 + $0xc] sm:$0xff]   ;;  %v1824_v5 = vld [vmem:[#allocation2 + $0x14] ss:$0 sps:$4 sm:$0xff]   ;;  %vm1969_vm2 = vmmov 0   ;;  %vm1358_vm3 = vcmask 261120  }
  0x39   :  { %1627 = vmatprep.subr.bf16.mxu1 %v1820_v1  ;;  %1618 = vmatpush3.bf16.msra.mxu0 %v1819_v0  ;;  %v1823_v4 = vld [vmem:[#allocation2 + $0x10] ss:$0 sps:$4 sm:$0xff]   ;;  %v1827_v8 = vld [vmem:[#allocation2 + $0x8] sm:$0xff]   ;;  %v178_v9 = vsel %vm96_vm0, %v1824_v5, 0  ;;  %v2045_v11 = vld [vmem:[#allocation5 + $0x8] sm:$0xff]   ;;  %s1971_s2 = smov [#allocation8]  }
  0x3a   :  { %1628 = vmatpush3.bf16.msra.mxu1 %v1820_v1  ;;  %1619 = vmatprep.subr.bf16.mxu0 %v1821_v2  ;;  %v2035_v6 = vld [vmem:[#allocation5] sm:$0xff]   ;;  %v98_v7 = vsel %vm96_vm0, %v1823_v4, 0  ;;  %v1831_v14 = vld [vmem:[#allocation2 + $0x18] ss:$0 sps:$4 sm:$0xff]   ;;  %v1832_v15 = vld [vmem:[#allocation2 + $0x1c] ss:$0 sps:$4 sm:$0xff]  }
  0x3b   :  { %1629 = vmatprep.subr.bf16.mxu1 %v1822_v3  ;;  %1623 = vmatprep.mubr.msk.bf16.mxu0 %vm89_vm1, %v2035_v6  ;;  %v1828_v10 = vld [vmem:[#allocation2 + $0xc] sm:$0xff]   ;;  %v1830_v13 = vld [vmem:[#allocation2 + $0x14] sm:$0xff]   ;;  %v258_v16 = vsel %vm96_vm0, %v1831_v14, 0  ;;  %v338_v18 = vsel %vm96_vm0, %v1832_v15, 0  ;;  %v1836_v21 = vld [vmem:[#allocation2 + $0x1c] sm:$0xff]   ;;  %s1439_s22 = sshll.u32 %s1971_s2, 4  ;;  %s1440_s22 = int_to_ptr.vmem [resolvable:$true] %s1439_s22 }
  0x3c   :  { %1633 = vmatprep.mubr.msk.bf16.mxu1 %vm89_vm1, %v2035_v6  ;;  %v1829_v12 = vld [vmem:[#allocation2 + $0x10] sm:$0xff]   ;;  %v1835_v20 = vld [vmem:[#allocation2 + $0x18] sm:$0xff]   ;;  %v1837_v22 = vld [vmem:[#allocation2 + $0x20] ss:$0 sps:$4 sm:$0xff]   ;;  %s1935_s23 = scalar_lea.vmem %s1440_s22, 16  ;;  %s1939_s24 = scalar_lea.vmem %s1440_s22, 32 }
  0x3d   :  { %1620 = vmatpush3.bf16.msra.mxu0 %v1821_v2  ;;  %v1833_v17 = vld [vmem:[#allocation2 + $0x10] sm:$0xff]   ;;  %v1838_v23 = vld [vmem:[#allocation2 + $0x24] ss:$0 sps:$4 sm:$0xff]   ;;  %v418_v24 = vsel %vm96_vm0, %v1837_v22, 0  ;;  %v1839_v25 = vld [vmem:[#allocation2 + $0x18] sm:$0xff]   ;;  %v1968_v2 = vmov 0.0|0.0   ;;  %p1936_p10 = scmp.ne.s32.totalorder %s1440_s22, %s1935_s23  ;;  %p1940_p11 = scmp.lt.s32.totalorder %s1440_s22, %s1440_s22 }
  0x3e   :  { %1630 = vmatpush3.bf16.msra.mxu1 %v1822_v3  ;;  %1794 = vmatprep.subr.msk.bf16.mxu0 %vm96_vm0, %v1823_v4  ;;  %v1834_v19 = vld [vmem:[#allocation2 + $0x14] sm:$0xff]   ;;  %v498_v26 = vsel %vm96_vm0, %v1838_v23, 0  ;;  %v1840_v27 = vld [vmem:[#allocation2 + $0x1c] sm:$0xff]   ;;  %v1842_v29 = vld [vmem:[#allocation2 + $0x24] sm:$0xff]   ;;  %v1970_v3 = vmov 0.0   ;;  %p1941_p12 = scmp.lt.s32.totalorder %s1939_s24, %s1935_s23 }
  0x3f   :  { %1795 = vmatprep.subr.msk.bf16.mxu1 %vm96_vm0, %v1824_v5  ;;  %v1841_v28 = vld [vmem:[#allocation2 + $0x20] sm:$0xff]   ;;  %v1843_v30 = vld [vmem:[#allocation2 + $0x28] ss:$0 sps:$4 sm:$0xff]   ;;  %v1844_v31 = vld [vmem:[#allocation2 + $0x2c] ss:$0 sps:$4 sm:$0xff]  }
  0x40   :  { %v578_v32 = vsel %vm96_vm0, %v1843_v30, 0  ;;  %v1845_v33 = vld [vmem:[#allocation2 + $0x20] sm:$0xff]   ;;  %v658_v34 = vsel %vm96_vm0, %v1844_v31, 0  ;;  %v1847_v36 = vld [vmem:[#allocation2 + $0x28] sm:$0xff]   ;;  %v1849_v38 = vld [vmem:[#allocation2 + $0x30] ss:$0 sps:$4 sm:$0xff]   ;;  %p1942_p13 = por %p1941_p12, %p1940_p11 }
  0x41   :  { %1622 = vmatpush3.bf16.msra.mxu0 %v98_v7  ;;  %v1846_v35 = vld [vmem:[#allocation2 + $0x24] sm:$0xff]   ;;  %v1848_v37 = vld [vmem:[#allocation2 + $0x2c] sm:$0xff]   ;;  %v1850_v39 = vld [vmem:[#allocation2 + $0x34] ss:$0 sps:$4 sm:$0xff]   ;;  %v738_v40 = vsel %vm96_vm0, %v1849_v38, 0 }
  0x42   :  { %1632 = vmatpush3.bf16.msra.mxu1 %v178_v9  ;;  %1637 = vmatprep.subr.bf16.mxu0 %v1827_v8  ;;  %v1851_v41 = vld [vmem:[#allocation2 + $0x28] sm:$0xff]   ;;  %v818_v42 = vsel %vm96_vm0, %v1850_v39, 0  ;;  %v1853_v44 = vld [vmem:[#allocation2 + $0x30] sm:$0xff]   ;;  %v1855_v46 = vld [vmem:[#allocation2 + $0x38] ss:$0 sps:$4 sm:$0xff]   ;;  %p1943_p0 = pnand %p1942_p13, %p1936_p10 }
  0x43   :  { %1647 = vmatprep.subr.bf16.mxu1 %v1828_v10  ;;  %v1852_v43 = vld [vmem:[#allocation2 + $0x2c] sm:$0xff]   ;;  %v1854_v45 = vld [vmem:[#allocation2 + $0x34] sm:$0xff]   ;;  %v1856_v47 = vld [vmem:[#allocation2 + $0x3c] ss:$0 sps:$4 sm:$0xff]   ;;  %v898_v48 = vsel %vm96_vm0, %v1855_v46, 0 }
  0x44   :  { %1624 = vmatmul.mubr.msk.bf16.vlgmr.msra.gmra.mrb[0].mxu0 %vm89_vm1, %v2045_v11  ;;  %v1857_v49 = vld [vmem:[#allocation2 + $0x30] sm:$0xff]   ;;  %v978_v50 = vsel %vm96_vm0, %v1856_v47, 0  ;;  %v1859_v52 = vld [vmem:[#allocation2 + $0x38] sm:$0xff]   ;;  %v1861_v54 = vld [vmem:[#allocation2 + $0x40] ss:$0 sps:$4 sm:$0xff]  }
  0x45   :  { %1634 = vmatmul.mubr.msk.bf16.vlgmr.msra.gmra.mrb[0].mxu1 %vm89_vm1, %v2045_v11  ;;  %1638 = vmatpush3.bf16.msra.mxu0 %v1827_v8  ;;  %v1858_v51 = vld [vmem:[#allocation2 + $0x34] sm:$0xff]   ;;  %v1860_v53 = vld [vmem:[#allocation2 + $0x3c] sm:$0xff]   ;;  %v1862_v55 = vld [vmem:[#allocation2 + $0x44] ss:$0 sps:$4 sm:$0xff]   ;;  %v1058_v56 = vsel %vm96_vm0, %v1861_v54, 0 }
  0x46   :  { %1648 = vmatpush3.bf16.msra.mxu1 %v1828_v10  ;;  %1639 = vmatprep.subr.bf16.mxu0 %v1829_v12  ;;  %v1863_v57 = vld [vmem:[#allocation2 + $0x38] sm:$0xff]   ;;  %v1138_v58 = vsel %vm96_vm0, %v1862_v55, 0  ;;  %v1865_v60 = vld [vmem:[#allocation2 + $0x40] sm:$0xff]   ;;  %v1867_v62 = vld [vmem:[#allocation2 + $0x48] ss:$0 sps:$4 sm:$0xff]  }
  0x47   :  { %1649 = vmatprep.subr.bf16.mxu1 %v1830_v13  ;;  %1643 = vmatprep.mubr.msk.bf16.mxu0 %vm89_vm1, %v2035_v6  ;;  %v1864_v59 = vld [vmem:[#allocation2 + $0x3c] sm:$0xff]   ;;  %v1866_v61 = vld [vmem:[#allocation2 + $0x44] sm:$0xff]   ;;  %v1868_v63 = vld [vmem:[#allocation2 + $0x4c] ss:$0 sps:$4 sm:$0xff]   ;;  %v1218_v0 = vsel %vm96_vm0, %v1867_v62, 0 }
  0x48   :  { %1653 = vmatprep.mubr.msk.bf16.mxu1 %vm89_vm1, %v2035_v6  ;;  %v1298_v1 = vsel %vm96_vm0, %v1868_v63, 0 }
  0x49   :  { %1640 = vmatpush3.bf16.msra.mxu0 %v1829_v12 }
  0x4a   :  { %1650 = vmatpush3.bf16.msra.mxu1 %v1830_v13  ;;  %1796 = vmatprep.subr.msk.bf16.mxu0 %vm96_vm0, %v1831_v14 }
  0x4b   :  { %1797 = vmatprep.subr.msk.bf16.mxu1 %vm96_vm0, %v1832_v15 }
  0x4d   :  { %1642 = vmatpush3.bf16.msra.mxu0 %v258_v16 }
  0x4e   :  { %1652 = vmatpush3.bf16.msra.mxu1 %v338_v18  ;;  %1657 = vmatprep.subr.bf16.mxu0 %v1833_v17 }
  0x4f   :  { %1667 = vmatprep.subr.bf16.mxu1 %v1834_v19 }
  0x50   :  { %1644 = vmatmul.mubr.msk.bf16.vlgmr.msra.gmra.mrb[4].mxu0 %vm89_vm1, %v2045_v11 }
  0x51   :  { %1654 = vmatmul.mubr.msk.bf16.vlgmr.msra.gmra.mrb[4].mxu1 %vm89_vm1, %v2045_v11  ;;  %1658 = vmatpush3.bf16.msra.mxu0 %v1833_v17 }
  0x52   :  { %1668 = vmatpush3.bf16.msra.mxu1 %v1834_v19  ;;  %1659 = vmatprep.subr.bf16.mxu0 %v1835_v20 }
  0x53   :  { %1669 = vmatprep.subr.bf16.mxu1 %v1836_v21  ;;  %1663 = vmatprep.mubr.msk.bf16.mxu0 %vm89_vm1, %v2035_v6 }
  0x54   :  { %1673 = vmatprep.mubr.msk.bf16.mxu1 %vm89_vm1, %v2035_v6 }
  0x55   :  { %1660 = vmatpush3.bf16.msra.mxu0 %v1835_v20 }
  0x56   :  { %1670 = vmatpush3.bf16.msra.mxu1 %v1836_v21  ;;  %1798 = vmatprep.subr.msk.bf16.mxu0 %vm96_vm0, %v1837_v22 }
  0x57   :  { %1799 = vmatprep.subr.msk.bf16.mxu1 %vm96_vm0, %v1838_v23 }
  0x59   :  { %1662 = vmatpush3.bf16.msra.mxu0 %v418_v24 }
  0x5a   :  { %1672 = vmatpush3.bf16.msra.mxu1 %v498_v26  ;;  %1677 = vmatprep.subr.bf16.mxu0 %v1839_v25 }
  0x5b   :  { %1687 = vmatprep.subr.bf16.mxu1 %v1840_v27 }
  0x5c   :  { %1664 = vmatmul.mubr.msk.bf16.vlgmr.msra.gmra.mrb[8].mxu0 %vm89_vm1, %v2045_v11 }
  0x5d   :  { %1674 = vmatmul.mubr.msk.bf16.vlgmr.msra.gmra.mrb[8].mxu1 %vm89_vm1, %v2045_v11  ;;  %1678 = vmatpush3.bf16.msra.mxu0 %v1839_v25 }
  0x5e   :  { %1688 = vmatpush3.bf16.msra.mxu1 %v1840_v27  ;;  %1679 = vmatprep.subr.bf16.mxu0 %v1841_v28 }
  0x5f   :  { %1689 = vmatprep.subr.bf16.mxu1 %v1842_v29  ;;  %1683 = vmatprep.mubr.msk.bf16.mxu0 %vm89_vm1, %v2035_v6 }
  0x60   :  { %1693 = vmatprep.mubr.msk.bf16.mxu1 %vm89_vm1, %v2035_v6 }
  0x61   :  { %1680 = vmatpush3.bf16.msra.mxu0 %v1841_v28 }
  0x62   :  { %1690 = vmatpush3.bf16.msra.mxu1 %v1842_v29  ;;  %1800 = vmatprep.subr.msk.bf16.mxu0 %vm96_vm0, %v1843_v30 }
  0x63   :  { %1801 = vmatprep.subr.msk.bf16.mxu1 %vm96_vm0, %v1844_v31 }
  0x65   :  { %1682 = vmatpush3.bf16.msra.mxu0 %v578_v32 }
  0x66   :  { %1692 = vmatpush3.bf16.msra.mxu1 %v658_v34  ;;  %1697 = vmatprep.subr.bf16.mxu0 %v1845_v33 }
  0x67   :  { %1707 = vmatprep.subr.bf16.mxu1 %v1846_v35 }
  0x68   :  { %1684 = vmatmul.mubr.msk.bf16.vlgmr.msra.gmra.mrb[12].mxu0 %vm89_vm1, %v2045_v11 }
  0x69   :  { %1694 = vmatmul.mubr.msk.bf16.vlgmr.msra.gmra.mrb[12].mxu1 %vm89_vm1, %v2045_v11  ;;  %1698 = vmatpush3.bf16.msra.mxu0 %v1845_v33 }
  0x6a   :  { %1708 = vmatpush3.bf16.msra.mxu1 %v1846_v35  ;;  %1699 = vmatprep.subr.bf16.mxu0 %v1847_v36 }
  0x6b   :  { %1709 = vmatprep.subr.bf16.mxu1 %v1848_v37  ;;  %1703 = vmatprep.mubr.msk.bf16.mxu0 %vm89_vm1, %v2035_v6 }
  0x6c   :  { %1713 = vmatprep.mubr.msk.bf16.mxu1 %vm89_vm1, %v2035_v6 }
  0x6d   :  { %1700 = vmatpush3.bf16.msra.mxu0 %v1847_v36 }
  0x6e   :  { %1710 = vmatpush3.bf16.msra.mxu1 %v1848_v37  ;;  %1802 = vmatprep.subr.msk.bf16.mxu0 %vm96_vm0, %v1849_v38 }
  0x6f   :  { %1803 = vmatprep.subr.msk.bf16.mxu1 %vm96_vm0, %v1850_v39 }
  0x71   :  { %1702 = vmatpush3.bf16.msra.mxu0 %v738_v40 }
  0x72   :  { %1712 = vmatpush3.bf16.msra.mxu1 %v818_v42  ;;  %1717 = vmatprep.subr.bf16.mxu0 %v1851_v41 }
  0x73   :  { %1727 = vmatprep.subr.bf16.mxu1 %v1852_v43 }
  0x74   :  { %1704 = vmatmul.mubr.msk.bf16.vlgmr.msra.gmra.mrb[16].mxu0 %vm89_vm1, %v2045_v11 }
  0x75   :  { %1714 = vmatmul.mubr.msk.bf16.vlgmr.msra.gmra.mrb[16].mxu1 %vm89_vm1, %v2045_v11  ;;  %1718 = vmatpush3.bf16.msra.mxu0 %v1851_v41 }
  0x76   :  { %1728 = vmatpush3.bf16.msra.mxu1 %v1852_v43  ;;  %1719 = vmatprep.subr.bf16.mxu0 %v1853_v44 }
  0x77   :  { %1729 = vmatprep.subr.bf16.mxu1 %v1854_v45  ;;  %1723 = vmatprep.mubr.msk.bf16.mxu0 %vm89_vm1, %v2035_v6 }
  0x78   :  { %1733 = vmatprep.mubr.msk.bf16.mxu1 %vm89_vm1, %v2035_v6 }
  0x79   :  { %1720 = vmatpush3.bf16.msra.mxu0 %v1853_v44 }
  0x7a   :  { %1730 = vmatpush3.bf16.msra.mxu1 %v1854_v45  ;;  %1804 = vmatprep.subr.msk.bf16.mxu0 %vm96_vm0, %v1855_v46 }
  0x7b   :  { %1805 = vmatprep.subr.msk.bf16.mxu1 %vm96_vm0, %v1856_v47 }
  0x7d   :  { %1722 = vmatpush3.bf16.msra.mxu0 %v898_v48 }
  0x7e   :  { %1732 = vmatpush3.bf16.msra.mxu1 %v978_v50  ;;  %1737 = vmatprep.subr.bf16.mxu0 %v1857_v49 }
  0x7f   :  { %1747 = vmatprep.subr.bf16.mxu1 %v1858_v51 }
  0x80   :  { %1724 = vmatmul.mubr.msk.bf16.vlgmr.msra.gmra.mrb[20].mxu0 %vm89_vm1, %v2045_v11 }
  0x81   :  { %1734 = vmatmul.mubr.msk.bf16.vlgmr.msra.gmra.mrb[20].mxu1 %vm89_vm1, %v2045_v11  ;;  %1738 = vmatpush3.bf16.msra.mxu0 %v1857_v49 }
  0x82   :  { %1748 = vmatpush3.bf16.msra.mxu1 %v1858_v51  ;;  %1739 = vmatprep.subr.bf16.mxu0 %v1859_v52 }
  0x83   :  { %1749 = vmatprep.subr.bf16.mxu1 %v1860_v53  ;;  %1743 = vmatprep.mubr.msk.bf16.mxu0 %vm89_vm1, %v2035_v6 }
  0x84   :  { %1753 = vmatprep.mubr.msk.bf16.mxu1 %vm89_vm1, %v2035_v6 }
  0x85   :  { %1740 = vmatpush3.bf16.msra.mxu0 %v1859_v52 }
  0x86   :  { %1750 = vmatpush3.bf16.msra.mxu1 %v1860_v53  ;;  %1806 = vmatprep.subr.msk.bf16.mxu0 %vm96_vm0, %v1861_v54 }
  0x87   :  { %1807 = vmatprep.subr.msk.bf16.mxu1 %vm96_vm0, %v1862_v55 }
  0x89   :  { %1742 = vmatpush3.bf16.msra.mxu0 %v1058_v56 }
  0x8a   :  { %1752 = vmatpush3.bf16.msra.mxu1 %v1138_v58  ;;  %1757 = vmatprep.subr.bf16.mxu0 %v1863_v57 }
  0x8b   :  { %1767 = vmatprep.subr.bf16.mxu1 %v1864_v59 }
  0x8c   :  { %1744 = vmatmul.mubr.msk.bf16.vlgmr.msra.gmra.mrb[24].mxu0 %vm89_vm1, %v2045_v11 }
  0x8d   :  { %1754 = vmatmul.mubr.msk.bf16.vlgmr.msra.gmra.mrb[24].mxu1 %vm89_vm1, %v2045_v11  ;;  %1758 = vmatpush3.bf16.msra.mxu0 %v1863_v57 }
  0x8e   :  { %1768 = vmatpush3.bf16.msra.mxu1 %v1864_v59  ;;  %1759 = vmatprep.subr.bf16.mxu0 %v1865_v60 }
  0x8f   :  { %1769 = vmatprep.subr.bf16.mxu1 %v1866_v61  ;;  %1763 = vmatprep.mubr.msk.bf16.mxu0 %vm89_vm1, %v2035_v6 }
  0x90   :  { %1773 = vmatprep.mubr.msk.bf16.mxu1 %vm89_vm1, %v2035_v6 }
  0x91   :  { %1760 = vmatpush3.bf16.msra.mxu0 %v1865_v60 }
  0x92   :  { %1770 = vmatpush3.bf16.msra.mxu1 %v1866_v61  ;;  %1808 = vmatprep.subr.msk.bf16.mxu0 %vm96_vm0, %v1867_v62 }
  0x93   :  { %1809 = vmatprep.subr.msk.bf16.mxu1 %vm96_vm0, %v1868_v63 }
  0x95   :  { %1762 = vmatpush3.bf16.msra.mxu0 %v1218_v0 }
  0x96   :  { %1772 = vmatpush3.bf16.msra.mxu1 %v1298_v1  ;;  %1788 = vmatprep.subr.bf16.mxu0 %v1968_v2 }
  0x98   :  { %1764 = vmatmul.mubr.msk.bf16.vlgmr.msra.gmra.mrb[28].mxu0 %vm89_vm1, %v2045_v11 }
  0x99   :  { %1774 = vmatmul.mubr.msk.bf16.vlgmr.msra.gmra.mrb[28].mxu1 %vm89_vm1, %v2045_v11  ;;  %1785 = vmatprep.mubr.msk.f32.mxu0 %vm1969_vm2, %v1970_v3 }
 0x117   :  { %v1625_v4 = vpop.f32.mrb[0].mxu0 }
 0x118   :  { %v151_v5 = vmax.f32 %v1625_v4, 0.0  ;;  %v1635_v6 = vpop.f32.mrb[0].mxu1  ;;  %v134_v7 = vpop.f32.mrb[1].mxu0 }
 0x119   :  { %v231_v8 = vmax.f32 %v1635_v6, 0.0  ;;  %v149_v9 = vmax.f32 %v134_v7, 0.0  ;;  %v214_v10 = vpop.f32.mrb[1].mxu1  ;;  %v1626_v12 = vpop.f32.mrb[2].mxu0 }
 0x11a   :  { %v229_v13 = vmax.f32 %v214_v10, 0.0  ;;  %v152_v14 = vmax.f32 %v1626_v12, 0.0  ;;  %v1636_v15 = vpop.f32.mrb[2].mxu1  ;;  %v137_v16 = vpop.f32.mrb[3].mxu0 }
 0x11b   :  { %v235_v17 = vadd.f32 %v231_v8, %v151_v5  ;;  %v232_v11 = vmax.f32 %v1636_v15, 0.0  ;;  %v150_v18 = vmax.f32 %v137_v16, 0.0  ;;  %v217_v19 = vpop.f32.mrb[3].mxu1 }
 0x11c   :  { %v233_v20 = vadd.f32 %v229_v13, %v149_v9  ;;  %v230_v21 = vmax.f32 %v217_v19, 0.0 }
 0x11d   :  { %v236_v22 = vadd.f32 %v232_v11, %v152_v14 }
 0x11e   :  { %v234_v23 = vadd.f32 %v230_v21, %v150_v18 }
 0x123   :  { %v1645_v24 = vpop.f32.mrb[4].mxu0 }
 0x124   :  { %v311_v25 = vmax.f32 %v1645_v24, 0.0  ;;  %v1655_v26 = vpop.f32.mrb[4].mxu1  ;;  %v294_v27 = vpop.f32.mrb[5].mxu0 }
 0x125   :  { %v391_v28 = vmax.f32 %v1655_v26, 0.0  ;;  %v309_v29 = vmax.f32 %v294_v27, 0.0  ;;  %v374_v30 = vpop.f32.mrb[5].mxu1  ;;  %v1646_v31 = vpop.f32.mrb[6].mxu0 }
 0x126   :  { %v315_v32 = vadd.f32 %v311_v25, %v235_v17  ;;  %v389_v33 = vmax.f32 %v374_v30, 0.0  ;;  %v312_v34 = vmax.f32 %v1646_v31, 0.0  ;;  %v1656_v35 = vpop.f32.mrb[6].mxu1  ;;  %v297_v36 = vpop.f32.mrb[7].mxu0 }
 0x127   :  { %v313_v37 = vadd.f32 %v309_v29, %v233_v20  ;;  %v392_v38 = vmax.f32 %v1656_v35, 0.0  ;;  %v310_v39 = vmax.f32 %v297_v36, 0.0  ;;  %v377_v40 = vpop.f32.mrb[7].mxu1 }
 0x128   :  { %v395_v41 = vadd.f32 %v391_v28, %v315_v32  ;;  %v316_v42 = vadd.f32 %v312_v34, %v236_v22  ;;  %v390_v45 = vmax.f32 %v377_v40, 0.0 }
 0x129   :  { %v393_v43 = vadd.f32 %v389_v33, %v313_v37  ;;  %v314_v44 = vadd.f32 %v310_v39, %v234_v23 }
 0x12a   :  { %v396_v46 = vadd.f32 %v392_v38, %v316_v42 }
 0x12b   :  { %v394_v47 = vadd.f32 %v390_v45, %v314_v44 }
 0x12f   :  { %v1665_v48 = vpop.f32.mrb[8].mxu0 }
 0x130   :  { %v471_v49 = vmax.f32 %v1665_v48, 0.0  ;;  %v1675_v50 = vpop.f32.mrb[8].mxu1  ;;  %v454_v51 = vpop.f32.mrb[9].mxu0 }
 0x131   :  { %v551_v52 = vmax.f32 %v1675_v50, 0.0  ;;  %v469_v53 = vmax.f32 %v454_v51, 0.0  ;;  %v534_v54 = vpop.f32.mrb[9].mxu1  ;;  %v1666_v55 = vpop.f32.mrb[10].mxu0 }
 0x132   :  { %v475_v56 = vadd.f32 %v471_v49, %v395_v41  ;;  %v549_v57 = vmax.f32 %v534_v54, 0.0  ;;  %v472_v58 = vmax.f32 %v1666_v55, 0.0  ;;  %v1676_v59 = vpop.f32.mrb[10].mxu1  ;;  %v457_v60 = vpop.f32.mrb[11].mxu0 }
 0x133   :  { %v473_v61 = vadd.f32 %v469_v53, %v393_v43  ;;  %v552_v62 = vmax.f32 %v1676_v59, 0.0  ;;  %v470_v63 = vmax.f32 %v457_v60, 0.0  ;;  %v537_v0 = vpop.f32.mrb[11].mxu1 }
 0x134   :  { %v555_v1 = vadd.f32 %v551_v52, %v475_v56  ;;  %v476_v3 = vadd.f32 %v472_v58, %v396_v46  ;;  %v550_v6 = vmax.f32 %v537_v0, 0.0 }
 0x135   :  { %v553_v4 = vadd.f32 %v549_v57, %v473_v61  ;;  %v474_v5 = vadd.f32 %v470_v63, %v394_v47 }
 0x136   :  { %v556_v7 = vadd.f32 %v552_v62, %v476_v3 }
 0x137   :  { %v554_v8 = vadd.f32 %v550_v6, %v474_v5 }
 0x13b   :  { %v1685_v9 = vpop.f32.mrb[12].mxu0 }
 0x13c   :  { %v631_v10 = vmax.f32 %v1685_v9, 0.0  ;;  %v1695_v12 = vpop.f32.mrb[12].mxu1  ;;  %v614_v13 = vpop.f32.mrb[13].mxu0 }
 0x13d   :  { %v711_v14 = vmax.f32 %v1695_v12, 0.0  ;;  %v629_v15 = vmax.f32 %v614_v13, 0.0  ;;  %v694_v16 = vpop.f32.mrb[13].mxu1  ;;  %v1686_v17 = vpop.f32.mrb[14].mxu0 }
 0x13e   :  { %v635_v11 = vadd.f32 %v631_v10, %v555_v1  ;;  %v709_v18 = vmax.f32 %v694_v16, 0.0  ;;  %v632_v19 = vmax.f32 %v1686_v17, 0.0  ;;  %v1696_v20 = vpop.f32.mrb[14].mxu1  ;;  %v617_v21 = vpop.f32.mrb[15].mxu0 }
 0x13f   :  { %v633_v22 = vadd.f32 %v629_v15, %v553_v4  ;;  %v712_v23 = vmax.f32 %v1696_v20, 0.0  ;;  %v630_v24 = vmax.f32 %v617_v21, 0.0  ;;  %v697_v25 = vpop.f32.mrb[15].mxu1 }
 0x140   :  { %v715_v26 = vadd.f32 %v711_v14, %v635_v11  ;;  %v636_v27 = vadd.f32 %v632_v19, %v556_v7  ;;  %v710_v30 = vmax.f32 %v697_v25, 0.0 }
 0x141   :  { %v713_v28 = vadd.f32 %v709_v18, %v633_v22  ;;  %v634_v29 = vadd.f32 %v630_v24, %v554_v8 }
 0x142   :  { %v716_v31 = vadd.f32 %v712_v23, %v636_v27 }
 0x143   :  { %v714_v32 = vadd.f32 %v710_v30, %v634_v29 }
 0x147   :  { %v1705_v33 = vpop.f32.mrb[16].mxu0 }
 0x148   :  { %v791_v34 = vmax.f32 %v1705_v33, 0.0  ;;  %v1715_v35 = vpop.f32.mrb[16].mxu1  ;;  %v774_v36 = vpop.f32.mrb[17].mxu0 }
 0x149   :  { %v871_v37 = vmax.f32 %v1715_v35, 0.0  ;;  %v789_v38 = vmax.f32 %v774_v36, 0.0  ;;  %v854_v39 = vpop.f32.mrb[17].mxu1  ;;  %v1706_v40 = vpop.f32.mrb[18].mxu0 }
 0x14a   :  { %v795_v41 = vadd.f32 %v791_v34, %v715_v26  ;;  %v869_v42 = vmax.f32 %v854_v39, 0.0  ;;  %v792_v43 = vmax.f32 %v1706_v40, 0.0  ;;  %v1716_v44 = vpop.f32.mrb[18].mxu1  ;;  %v777_v45 = vpop.f32.mrb[19].mxu0 }
 0x14b   :  { %v793_v46 = vadd.f32 %v789_v38, %v713_v28  ;;  %v872_v47 = vmax.f32 %v1716_v44, 0.0  ;;  %v790_v48 = vmax.f32 %v777_v45, 0.0  ;;  %v857_v49 = vpop.f32.mrb[19].mxu1 }
 0x14c   :  { %v875_v50 = vadd.f32 %v871_v37, %v795_v41  ;;  %v796_v51 = vadd.f32 %v792_v43, %v716_v31  ;;  %v870_v54 = vmax.f32 %v857_v49, 0.0 }
 0x14d   :  { %v873_v52 = vadd.f32 %v869_v42, %v793_v46  ;;  %v794_v53 = vadd.f32 %v790_v48, %v714_v32 }
 0x14e   :  { %v876_v55 = vadd.f32 %v872_v47, %v796_v51 }
 0x14f   :  { %v874_v56 = vadd.f32 %v870_v54, %v794_v53 }
 0x153   :  { %v1725_v57 = vpop.f32.mrb[20].mxu0 }
 0x154   :  { %v951_v58 = vmax.f32 %v1725_v57, 0.0  ;;  %v1735_v59 = vpop.f32.mrb[20].mxu1  ;;  %v934_v60 = vpop.f32.mrb[21].mxu0 }
 0x155   :  { %v1031_v61 = vmax.f32 %v1735_v59, 0.0  ;;  %v949_v62 = vmax.f32 %v934_v60, 0.0  ;;  %v1014_v63 = vpop.f32.mrb[21].mxu1  ;;  %v1726_v0 = vpop.f32.mrb[22].mxu0 }
 0x156   :  { %v955_v1 = vadd.f32 %v951_v58, %v875_v50  ;;  %v1029_v3 = vmax.f32 %v1014_v63, 0.0  ;;  %v952_v4 = vmax.f32 %v1726_v0, 0.0  ;;  %v1736_v5 = vpop.f32.mrb[22].mxu1  ;;  %v937_v6 = vpop.f32.mrb[23].mxu0 }
 0x157   :  { %v953_v7 = vadd.f32 %v949_v62, %v873_v52  ;;  %v1032_v8 = vmax.f32 %v1736_v5, 0.0  ;;  %v950_v9 = vmax.f32 %v937_v6, 0.0  ;;  %v1017_v10 = vpop.f32.mrb[23].mxu1  ;;  %v1357_v5 = vld [vmem:[#allocation7] sm:$0x1] }
 0x158   :  { %v1035_v12 = vadd.f32 %v1031_v61, %v955_v1  ;;  %v956_v13 = vadd.f32 %v952_v4, %v876_v55  ;;  %v1030_v16 = vmax.f32 %v1017_v10, 0.0 }
 0x159   :  { %v1033_v14 = vadd.f32 %v1029_v3, %v953_v7  ;;  %v954_v15 = vadd.f32 %v950_v9, %v874_v56 }
 0x15a   :  { %v1036_v17 = vadd.f32 %v1032_v8, %v956_v13 }
 0x15b   :  { %v1034_v11 = vadd.f32 %v1030_v16, %v954_v15 }
 0x15f   :  { %v1745_v18 = vpop.f32.mrb[24].mxu0 }
 0x160   :  { %v1111_v19 = vmax.f32 %v1745_v18, 0.0  ;;  %v1755_v20 = vpop.f32.mrb[24].mxu1  ;;  %v1094_v21 = vpop.f32.mrb[25].mxu0 }
 0x161   :  { %v1191_v22 = vmax.f32 %v1755_v20, 0.0  ;;  %v1109_v23 = vmax.f32 %v1094_v21, 0.0  ;;  %v1174_v24 = vpop.f32.mrb[25].mxu1  ;;  %v1746_v25 = vpop.f32.mrb[26].mxu0 }
 0x162   :  { %v1115_v26 = vadd.f32 %v1111_v19, %v1035_v12  ;;  %v1189_v27 = vmax.f32 %v1174_v24, 0.0  ;;  %v1112_v28 = vmax.f32 %v1746_v25, 0.0  ;;  %v1756_v29 = vpop.f32.mrb[26].mxu1  ;;  %v1097_v30 = vpop.f32.mrb[27].mxu0 }
 0x163   :  { %v1113_v31 = vadd.f32 %v1109_v23, %v1033_v14  ;;  %v1192_v32 = vmax.f32 %v1756_v29, 0.0  ;;  %v1110_v33 = vmax.f32 %v1097_v30, 0.0  ;;  %v1177_v34 = vpop.f32.mrb[27].mxu1 }
 0x164   :  { %v1195_v35 = vadd.f32 %v1191_v22, %v1115_v26  ;;  %v1116_v36 = vadd.f32 %v1112_v28, %v1036_v17  ;;  %v1190_v39 = vmax.f32 %v1177_v34, 0.0 }
 0x165   :  { %v1193_v37 = vadd.f32 %v1189_v27, %v1113_v31  ;;  %v1114_v38 = vadd.f32 %v1110_v33, %v1034_v11 }
 0x166   :  { %v1196_v40 = vadd.f32 %v1192_v32, %v1116_v36 }
 0x167   :  { %v1194_v41 = vadd.f32 %v1190_v39, %v1114_v38 }
 0x16b   :  { %v1765_v42 = vpop.f32.mrb[28].mxu0 }
 0x16c   :  { %v1271_v43 = vmax.f32 %v1765_v42, 0.0  ;;  %v1775_v44 = vpop.f32.mrb[28].mxu1  ;;  %v1254_v45 = vpop.f32.mrb[29].mxu0 }
 0x16d   :  { %v1351_v46 = vmax.f32 %v1775_v44, 0.0  ;;  %v1269_v47 = vmax.f32 %v1254_v45, 0.0  ;;  %v1334_v48 = vpop.f32.mrb[29].mxu1  ;;  %v1766_v49 = vpop.f32.mrb[30].mxu0 }
 0x16e   :  { %v1275_v50 = vadd.f32 %v1271_v43, %v1195_v35  ;;  %v1349_v51 = vmax.f32 %v1334_v48, 0.0  ;;  %v1272_v52 = vmax.f32 %v1766_v49, 0.0  ;;  %v1776_v53 = vpop.f32.mrb[30].mxu1  ;;  %v1257_v54 = vpop.f32.mrb[31].mxu0 }
 0x16f   :  { %v1273_v55 = vadd.f32 %v1269_v47, %v1193_v37  ;;  %v1270_v56 = vmax.f32 %v1257_v54, 0.0  ;;  %v1337_v57 = vpop.f32.mrb[31].mxu1  ;;  %v1352_v60 = vmax.f32 %v1776_v53, 0.0 }
 0x170   :  { %v1355_v58 = vadd.f32 %v1351_v46, %v1275_v50  ;;  %v1276_v59 = vadd.f32 %v1272_v52, %v1196_v40  ;;  %v1350_v63 = vmax.f32 %v1337_v57, 0.0 }
 0x171   :  { %v1353_v61 = vadd.f32 %v1349_v51, %v1273_v55  ;;  %v1274_v62 = vadd.f32 %v1270_v56, %v1194_v41 }
 0x172   :  { %v1356_v0 = vadd.f32 %v1352_v60, %v1276_v59 }
 0x173   :  { %v1354_v1 = vadd.f32 %v1350_v63, %v1274_v62 }
 0x174   :  { %v1792_v3 = vpack.c.bf16 %v1356_v0, %v1355_v58 }
 0x175   :  { %v1789_v4 = vpack.c.bf16 %v1354_v1, %v1353_v61 }
 0x177   :  { %1790 = vmatpush3.bf16.msra.mxu0 %v1789_v4 }
 0x178   :  { %1791 = vmatprep.subr.bf16.mxu0 %v1968_v2 }
 0x17b   :  { %1793 = vmatpush3.bf16.msra.mxu0 %v1792_v3 }
 0x17e   :  { %1786 = vmatmul.mubr.msk.f32.vlgmr.msra.gmra.mrb[32].mxu0 %vm1358_vm3, %v1357_v5 }
 0x251   :  { %v1428_v6 = vpop.f32.mrb[32].mxu0 }
 0x252   :  { %1432 = vst [vmem:[#allocation8] sm:$0x1] %v1428_v6  ;;  %v1787_v7 = vpop.f32.mrb[33].mxu0 }
 0x253   :  { %1946 = shalt.err (!%p1943_p0)
}
 0x254   :  { %s1947_s27 = scalar_lea.hbm %s2152_s3, 16 }
 0x255   :  { %p1948_p1 = scmp.ne.s32.totalorder %s2152_s3, %s1947_s27  ;;  %p1951_p2 = scmp.lt.u32.totalorder %s1947_s27, %s2152_s3 }
 0x257   :  { %p1953_p3 = pnand %p1951_p2, %p1948_p1 }
 0x259   :  { %1956 = shalt.err (!%p1953_p3)
}
 0x25a   :  { %1442 = dma.vmem_to_hbm [thread:$0]  %s1440_s22, 16, %s2152_s3, [#allocation4]  }
 0x25b   :  { %1961 = dma.done.wait [#allocation4], 16  }
 0x25c   :  { %1962 = vsyncadd [#allocation4], 4294967280 }
 0x25d   :  { %1446 = vsyncpa [#allocation3], 1 }
 0x25e   :  { %1447 = vsyncpa [#allocation6], 1 }
 0x25f   :  { %1448 = vsyncpa [#allocation4], 1 }

</bundles_post_ra>
